<compile_context>
chip_gen: v7x
topology: tpu7x:2x2x1
jax: 0.10.0
libtpu: 0.0.40
codegen_flags: <defaults>
</compile_context>

<pallas_src>
import functools
import numpy as np
import jax
import jax.numpy as jnp
from jax.experimental import pallas as pl
from jax.experimental.pallas import tpu as pltpu


# ----------------------------------------------------------------------------
# Host-side glue: build and fold the circuit unitaries (numpy, complex128).
# ----------------------------------------------------------------------------
def _kron_list(mats):
    out = mats[0]
    for m in mats[1:]:
        out = np.kron(out, m)
    return out


def _single_qubit_full(u2, wire, n):
    mats = [np.eye(2, dtype=np.complex128) for _ in range(n)]
    mats[wire] = u2
    return _kron_list(mats)


def _cnot_full(c, t, n):
    d = 2 ** n
    m = np.zeros((d, d), dtype=np.complex128)
    for s in range(d):
        sp = s ^ (1 << (n - 1 - t)) if (s >> (n - 1 - c)) & 1 else s
        m[sp, s] = 1.0
    return m


def _swap_full(a, b, n):
    d = 2 ** n
    m = np.zeros((d, d), dtype=np.complex128)
    for s in range(d):
        ba = (s >> (n - 1 - a)) & 1
        bb = (s >> (n - 1 - b)) & 1
        sp = s ^ ((1 << (n - 1 - a)) | (1 << (n - 1 - b))) if ba != bb else s
        m[sp, s] = 1.0
    return m


def _rot2(phi, theta, omega):
    # qml.Rot(phi, theta, omega) = RZ(omega) RY(theta) RZ(phi)
    c = np.cos(theta / 2.0)
    s = np.sin(theta / 2.0)
    return np.array(
        [
            [np.exp(-1j * (phi + omega) / 2.0) * c, -np.exp(1j * (phi - omega) / 2.0) * s],
            [np.exp(-1j * (phi - omega) / 2.0) * s, np.exp(1j * (phi + omega) / 2.0) * c],
        ],
        dtype=np.complex128,
    )


_H2 = (1.0 / np.sqrt(2.0)) * np.array([[1, 1], [1, -1]], dtype=np.complex128)
_T2 = np.diag([1.0, np.exp(1j * np.pi / 4.0)]).astype(np.complex128)


def build_circuit_gates(weights, agent_order, num_layers, num_qubits):
    """Ordered list of full-space unitaries for the VQC_Combined circuit."""
    n = num_qubits
    # agent with order 0 -> wires [0, n/2); order 1 -> wires [n/2, n)
    wire_assignment = [None] * n
    for agent, index in agent_order.items():
        for w in range(n // 2):
            wire_assignment[index * (n // 2) + w] = (agent, w)

    gates = []
    for layer in range(num_layers):
        for j in range(n):
            agent, aw = wire_assignment[j]
            phi, theta, omega = [float(v) for v in weights[agent][layer][aw]]
            gates.append(_single_qubit_full(_rot2(phi, theta, omega), j, n))
        gates.append(_cnot_full(0, 1, n))
        gates.append(_cnot_full(2, 3, n))
        gates.append(_single_qubit_full(_H2, 0, n))
        gates.append(_cnot_full(0, 2, n))
        gates.append(_single_qubit_full(_T2, 2, n))
        gates.append(_cnot_full(2, 3, n))
        gates.append(_swap_full(2, 3, n))
    return gates


def fold_circuit(gates):
    """Product of all gate unitaries (applied in circuit order) in complex128."""
    u = np.eye(gates[0].shape[0], dtype=np.complex128)
    for g in gates:
        u = g @ u
    return u


def _pick_pack():
    """Samples per lane row. 8 (256 lanes) matches v6e/v7x's 2x256^2 MXU;
    4 (128 lanes) matches v5e's 4x128^2 MXUs and is the safe default."""
    try:
        kind = jax.devices()[0].device_kind.lower()
        if "v6" in kind or "v7" in kind:
            return 8
    except Exception:
        pass
    return 4


def pack_operands(u_total, zmat, scale_vec, pack=4):
    """Pack the folded circuit into block-diagonal real f32 operands.

    Returns:
      w_pack : (pack*2D, pack*2D)  block-diag copies of the real block unitary
               [[Re(U^T), Im(U^T)], [-Im(U^T), Re(U^T)]]  (one block per sample slot).
      zs_pack: (pack*2D, pack*out_group)  block-diag PauliZ/scale/bias table,
               (zmat+1)/2*scale duplicated for re/im halves (bias folded in —
               exact for normalized statevectors).
      out_group : output lanes per sample slot (>= num_outputs, 128/pack).
    """
    d = u_total.shape[0]
    two_d = 2 * d
    a = zmat.shape[1]
    out_group = max(128 // pack, a)

    gr = np.real(u_total.T)
    gi = np.imag(u_total.T)
    w32 = np.block([[gr, gi], [-gi, gr]]).astype(np.float32)            # (2D, 2D)

    zs_half = (zmat.astype(np.float64) + 1.0) * 0.5 * scale_vec[None, :]  # (D, A)
    zs32 = np.zeros((two_d, out_group), dtype=np.float32)
    zs32[:d, :a] = zs_half
    zs32[d:, :a] = zs_half                                              # |re|^2 + |im|^2

    w_pack = np.zeros((pack * two_d, pack * two_d), dtype=np.float32)
    zs_pack = np.zeros((pack * two_d, pack * out_group), dtype=np.float32)
    for k in range(pack):
        w_pack[k * two_d:(k + 1) * two_d, k * two_d:(k + 1) * two_d] = w32
        zs_pack[k * two_d:(k + 1) * two_d, k * out_group:(k + 1) * out_group] = zs32
    return w_pack, zs_pack, out_group


def pack_states(state_idx, batch, d, pack):
    """One-hot basis states -> packed (R, pack*2D) rows, R a multiple of 8."""
    b_pad = ((batch + pack * 8 - 1) // (pack * 8)) * (pack * 8)
    st = np.zeros((b_pad, 2 * d), dtype=np.float32)                     # [real | imag]
    st[np.arange(batch), state_idx] = 1.0
    return st.reshape(b_pad // pack, pack * 2 * d)


# ----------------------------------------------------------------------------
# Pallas kernel: folded circuit (one MXU pass) + |psi|^2 projection (bias folded).
# ----------------------------------------------------------------------------
def vqc_kernel(st_ref, w_ref, zs_ref, out_ref):
    # Whole 22-gate-per-layer circuit for `pack` samples in one lane-dense matmul.
    y = jnp.dot(st_ref[...], w_ref[...], preferred_element_type=jnp.float32)   # (TB, pack*2D)
    # probs = re^2 + im^2 handled by the duplicated halves of zs; scale+bias folded.
    out_ref[...] = jnp.dot(y * y, zs_ref[...], preferred_element_type=jnp.float32)


def _round_up(x, m):
    return ((x + m - 1) // m) * m


@functools.partial(
    jax.jit, static_argnames=("batch", "num_outputs", "pack", "out_group", "block_b")
)
def vqc_forward(st_packed, w_pack, zs_pack, *, batch, num_outputs, pack, out_group,
                block_b=2048):
    """st_packed: (R, pack*2D) packed [real|imag] rows. Returns (batch, num_outputs)."""
    R, lanes_in = st_packed.shape
    lanes_out = pack * out_group

    if R <= 8:
        TB = R                                   # block == full dim (always legal)
    else:
        # Multiple of 8, and >=2 grid steps so v7x's 2nd TensorCore gets work.
        TB = min(block_b, _round_up(-(-R // 2), 8))
    grid = -(-R // TB)                           # ragged last tile: Pallas masks OOB rows

    out = pl.pallas_call(
        vqc_kernel,
        out_shape=jax.ShapeDtypeStruct((R, lanes_out), jnp.float32),
        grid_spec=pltpu.PrefetchScalarGridSpec(
            num_scalar_prefetch=0,
            grid=(grid,),
            in_specs=[
                pl.BlockSpec((TB, lanes_in), lambda i: (i, 0)),        # state tiles (pipelined)
                pl.BlockSpec((lanes_in, lanes_in), lambda i: (0, 0)),  # block-diag unitary (resident)
                pl.BlockSpec((lanes_in, lanes_out), lambda i: (0, 0)), # block-diag Z/scale/bias (resident)
            ],
            out_specs=pl.BlockSpec((TB, lanes_out), lambda i: (i, 0)),
        ),
        compiler_params=pltpu.CompilerParams(
            dimension_semantics=("parallel",),   # batch axis shards across v7x's 2 TCs
        ),
    )(st_packed, w_pack, zs_pack)

    # Unpack sample slots; padded slots hold exact zeros (bias folded into zs).
    return out.reshape(R * pack, out_group)[:batch, :num_outputs]


# ----------------------------------------------------------------------------
# Pure numpy reference (per-gate complex statevector sim) for verification.
# ----------------------------------------------------------------------------
def reference_forward(x1, x2, gates, zmat, scale_vec, n):
    d = 2 ** n
    B = x1.shape[0]
    out = np.zeros((B, zmat.shape[1]), dtype=np.float64)
    for b in range(B):
        bits = list(np.asarray(x1[b])) + list(np.asarray(x2[b]))
        idx = 0
        for w, bit in enumerate(bits):
            idx |= int(bit) << (n - 1 - w)
        psi = np.zeros(d, dtype=np.complex128)
        psi[idx] = 1.0
        for u in gates:
            psi = u @ psi
        probs = np.abs(psi) ** 2
        ev = probs @ zmat
        out[b] = (ev + 1.0) / 2.0 * scale_vec
    return out


# ----------------------------------------------------------------------------
# Main
# ----------------------------------------------------------------------------
if __name__ == "__main__":
    # Module hyperparameters (consistent with VQC_Combined.__init__).
    agents = ["agent_0", "agent_1"]
    agent_order = {"agent_0": 0, "agent_1": 1}
    observation_length = 2
    action_space_in = 2
    num_layers = 2

    num_qubits = max(2 * observation_length, 2 * action_space_in)   # 4
    action_space = 2 * action_space_in                               # 4 measured Z's
    D = 2 ** num_qubits                                              # 16
    batch = 2

    # Deterministic parameter init (mirrors torch.randn / torch.ones shapes).
    key = jax.random.PRNGKey(0)
    kw0, kw1, kx1, kx2 = jax.random.split(key, 4)
    weights = {
        "agent_0": np.asarray(jax.random.normal(kw0, (num_layers, num_qubits // 2, 3), jnp.float32)),
        "agent_1": np.asarray(jax.random.normal(kw1, (num_layers, num_qubits // 2, 3), jnp.float32)),
    }
    expected_val_scaling = {a: np.ones((action_space // 2,), dtype=np.float64) for a in agents}

    # Binary observations (BasisEmbedding inputs), shape (batch, observation_length).
    x1 = np.asarray(jax.random.randint(kx1, (batch, observation_length), 0, 2))
    x2 = np.asarray(jax.random.randint(kx2, (batch, observation_length), 0, 2))

    # Build and fold the circuit in complex128 (accuracy + 22 gates/layer -> 1 matmul).
    gates = build_circuit_gates(weights, agent_order, num_layers, num_qubits)
    u_total = fold_circuit(gates)

    # PauliZ expectation table: zmat[s, i] = (-1)^{bit_i(s)}  (wire 0 = MSB).
    zmat = np.zeros((D, action_space), dtype=np.float64)
    for s in range(D):
        for i in range(action_space):
            zmat[s, i] = 1.0 - 2.0 * ((s >> (num_qubits - 1 - i)) & 1)

    # Scale vector per VQC_Combined.scale(): indices [2*q, 2*q+1] <- scaling[agent].
    scale_vec = np.zeros((action_space,), dtype=np.float64)
    for agent, q_index in agent_order.items():
        scale_vec[2 * q_index + 0] = expected_val_scaling[agent][0]
        scale_vec[2 * q_index + 1] = expected_val_scaling[agent][1]

    # Pack operands (block-diagonal sample packing, bias folded into the Z table).
    pack = _pick_pack()
    w_pack, zs_pack, out_group = pack_operands(u_total, zmat, scale_vec, pack=pack)

    # Initial basis states -> packed [real | imag] rows (one-hot real, zero imag).
    state_idx = np.zeros((batch,), dtype=np.int64)
    for b in range(batch):
        bits = list(x1[b]) + list(x2[b])
        for w, bit in enumerate(bits):
            state_idx[b] |= int(bit) << (num_qubits - 1 - w)
    st_packed = pack_states(state_idx, batch, D, pack)

    # TODO(synk): per-agent Adam optimizers in __init__ are training state, not forward compute.
    # TODO(synk): optional bf16 cast of st/W (native MXU path) needs atol ~1e-2; kept f32 here.

    q_vals = vqc_forward(
        jnp.asarray(st_packed),
        jnp.asarray(w_pack),
        jnp.asarray(zs_pack),
        batch=batch,
        num_outputs=action_space,
        pack=pack,
        out_group=out_group,
        block_b=2048,
    )
    q_vals = jax.block_until_ready(q_vals)

    ref = reference_forward(x1, x2, gates, zmat, scale_vec, num_qubits)
    assert q_vals.shape == (batch, action_space)
    assert np.allclose(np.asarray(q_vals), ref, atol=1e-4), (np.asarray(q_vals), ref)

    print("KERNEL_OK")
</pallas_src>

<mosaic_0001>
module attributes {stable_mosaic.version = 11 : i64} {
  func.func @vqc_kernel(%arg0: i32, %arg1: memref<8x128xf32, #tpu.memory_space<vmem>>, %arg2: memref<128x128xf32, #tpu.memory_space<vmem>>, %arg3: memref<128x128xf32, #tpu.memory_space<vmem>>, %arg4: memref<8x128xf32, #tpu.memory_space<vmem>>) attributes {dimension_semantics = [#tpu.dimension_semantics<parallel>], iteration_bounds = array<i64: 1>, scalar_prefetch = 0 : i64, scratch_operands = 0 : i64, tpu.core_type = #tpu.core_type<tc>, window_params = [{transform_indices = @transform_0, window_bounds = array<i64: 8, 128>}, {pipeline_mode = #tpu.pipeline_mode<synchronous>, transform_indices = @transform_1, window_bounds = array<i64: 128, 128>}, {pipeline_mode = #tpu.pipeline_mode<synchronous>, transform_indices = @transform_2, window_bounds = array<i64: 128, 128>}, {transform_indices = @transform_3, window_bounds = array<i64: 8, 128>}]} {
    %c0 = arith.constant 0 : index
    %c0_0 = arith.constant 0 : index
    %0 = vector.load %arg1[%c0, %c0_0] : memref<8x128xf32, #tpu.memory_space<vmem>>, vector<8x128xf32>
    %c0_1 = arith.constant 0 : index
    %c0_2 = arith.constant 0 : index
    %1 = vector.load %arg2[%c0_1, %c0_2] : memref<128x128xf32, #tpu.memory_space<vmem>>, vector<128x128xf32>
    %cst = arith.constant dense<0.000000e+00> : vector<8x128xf32>
    %2 = tpu.matmul %0, %1, %cst {dimension_numbers = #tpu.dot_dimension_numbers<[1], [0], [0], [1], [0, 0, 1, 1], [], []>} : vector<8x128xf32>, vector<128x128xf32>, vector<8x128xf32> -> vector<8x128xf32>
    %3 = arith.mulf %2, %2 : vector<8x128xf32>
    %c0_3 = arith.constant 0 : index
    %c0_4 = arith.constant 0 : index
    %4 = vector.load %arg3[%c0_3, %c0_4] : memref<128x128xf32, #tpu.memory_space<vmem>>, vector<128x128xf32>
    %cst_5 = arith.constant dense<0.000000e+00> : vector<8x128xf32>
    %5 = tpu.matmul %3, %4, %cst_5 {dimension_numbers = #tpu.dot_dimension_numbers<[1], [0], [0], [1], [0, 0, 1, 1], [], []>} : vector<8x128xf32>, vector<128x128xf32>, vector<8x128xf32> -> vector<8x128xf32>
    %c0_6 = arith.constant 0 : index
    %c0_7 = arith.constant 0 : index
    %6 = vector.load %arg4[%c0_6, %c0_7] : memref<8x128xf32, #tpu.memory_space<vmem>>, vector<8x128xf32>
    tpu.vector_store %arg4[%c0_6, %c0_7], %5 {strides = array<i32>} : memref<8x128xf32, #tpu.memory_space<vmem>>, vector<8x128xf32>,
    return
  }
  func.func @transform_0(%arg0: i32) -> (i32, i32) {
    %c0_i32 = arith.constant 0 : i32
    %c0_i32_0 = arith.constant 0 : i32
    return %arg0, %c0_i32 : i32, i32
  }
  func.func @transform_1(%arg0: i32) -> (i32, i32) {
    %c0_i32 = arith.constant 0 : i32
    %c0_i32_0 = arith.constant 0 : i32
    %c0_i32_1 = arith.constant 0 : i32
    return %c0_i32, %c0_i32_0 : i32, i32
  }
  func.func @transform_2(%arg0: i32) -> (i32, i32) {
    %c0_i32 = arith.constant 0 : i32
    %c0_i32_0 = arith.constant 0 : i32
    %c0_i32_1 = arith.constant 0 : i32
    return %c0_i32, %c0_i32_0 : i32, i32
  }
  func.func @transform_3(%arg0: i32) -> (i32, i32) {
    %c0_i32 = arith.constant 0 : i32
    %c0_i32_0 = arith.constant 0 : i32
    return %arg0, %c0_i32 : i32, i32
  }
}

</mosaic_0001>

<bundles_post_ra>
// kernel: vqc_forward.1
= control target key start
LH: loop header
LB: loop body
LE: loop exit
PB: predicated region body
PF: predicated region fallthrough
CT: control target
= control target key end

     0   :  { %8 = vsyncpa [#allocation3], 0  ;;  %s553_s0 = inlined_call_operand.hbm [shape: f32[8,128], index: 0, kind: input, shape index: {}]   ;;  %s554_s1 = inlined_call_operand.hbm [shape: f32[128,128], index: 1, kind: input, shape index: {}]   ;;  %s555_s2 = inlined_call_operand.hbm [shape: f32[128,128], index: 2, kind: input, shape index: {}]   ;;  %s556_s3 = inlined_call_operand.vmem [shape: f32[8,128], index: 3, kind: output, shape index: {}]  }
   0x1   :  { %9 = vsyncpa [#allocation5], 0  ;;  %s464_s12 = smov [#allocation4]   ;;  %s394_s16 = scalar_lea.hbm %s554_s1, 2048 }
   0x2   :  { %s25_s13 = sshll.u32 %s464_s12, 4  ;;  %p395_p0 = scmp.ne.s32.totalorder %s554_s1, %s394_s16  ;;  %s26_s13 = int_to_ptr.vmem [resolvable:$true] %s25_s13 }
   0x3   :  { %p398_p1 = scmp.lt.u32.totalorder %s394_s16, %s554_s1 }
   0x5   :  { %p400_p2 = pnand %p398_p1, %p395_p0 }
   0x7   :  { %403 = shalt.err (!%p400_p2)
}
   0x8   :  { %s404_s21 = scalar_lea.vmem %s26_s13, 2048  ;;  %p409_p4 = scmp.lt.s32.totalorder %s26_s13, %s26_s13 }
   0x9   :  { %p405_p3 = scmp.ne.s32.totalorder %s26_s13, %s404_s21  ;;  %p410_p5 = scmp.lt.s32.totalorder %s404_s21, %s404_s21 }
   0xb   :  { %p411_p6 = por %p410_p5, %p409_p4 }
   0xd   :  { %p412_p7 = pnand %p411_p6, %p405_p3 }
   0xf   :  { %415 = shalt.err (!%p412_p7)
}
  0x10   :  { %s465_s22 = smov 128   ;;  %s466_s23 = smov 8  }
  0x11   :  { %31 = dma.hbm_to_vmem [thread:$0]  %s554_s1, 2048, %s26_s13, [#allocation5], %s465_s22, %s465_s22, %s466_s23  }
  0x12   :  { %s467_s26 = smov [#allocation2]   ;;  %s468_s28 = smov [#allocation6]  }
  0x13   :  { %s16_s27 = sshll.u32 %s467_s26, 4  ;;  %s37_s29 = sshll.u32 %s468_s28, 4  ;;  %s17_s27 = int_to_ptr.vmem [resolvable:$true] %s16_s27  ;;  %s38_s29 = int_to_ptr.vmem [resolvable:$true] %s37_s29 }
  0x14   :  { %s416_s5 = scalar_lea.hbm %s553_s0, 128 }
  0x15   :  { %p417_p8 = scmp.ne.s32.totalorder %s553_s0, %s416_s5  ;;  %p420_p9 = scmp.lt.u32.totalorder %s416_s5, %s553_s0 }
  0x17   :  { %p422_p10 = pnand %p420_p9, %p417_p8 }
  0x19   :  { %425 = shalt.err (!%p422_p10)
}
  0x1a   :  { %s426_s1 = scalar_lea.vmem %s17_s27, 128  ;;  %p431_p12 = scmp.lt.s32.totalorder %s17_s27, %s17_s27 }
  0x1b   :  { %p427_p11 = scmp.ne.s32.totalorder %s17_s27, %s426_s1  ;;  %p432_p13 = scmp.lt.s32.totalorder %s426_s1, %s426_s1 }
  0x1d   :  { %p433_p0 = por %p432_p13, %p431_p12 }
  0x1f   :  { %p434_p1 = pnand %p433_p0, %p427_p11 }
  0x21   :  { %437 = shalt.err (!%p434_p1)
}
  0x22   :  { %19 = dma.hbm_to_vmem [thread:$0]  %s553_s0, 128, %s17_s27, [#allocation3]  }
  0x23   :  { %s438_s14 = scalar_lea.hbm %s555_s2, 2048 }
  0x24   :  { %p439_p2 = scmp.ne.s32.totalorder %s555_s2, %s438_s14  ;;  %p442_p3 = scmp.lt.u32.totalorder %s438_s14, %s555_s2 }
  0x26   :  { %p444_p4 = pnand %p442_p3, %p439_p2 }
  0x28   :  { %447 = shalt.err (!%p444_p4)
}
  0x29   :  { %s448_s19 = scalar_lea.vmem %s38_s29, 2048  ;;  %p453_p6 = scmp.lt.s32.totalorder %s38_s29, %s38_s29 }
  0x2a   :  { %p449_p5 = scmp.ne.s32.totalorder %s38_s29, %s448_s19  ;;  %p454_p7 = scmp.lt.s32.totalorder %s448_s19, %s448_s19 }
  0x2c   :  { %p455_p8 = por %p454_p7, %p453_p6 }
  0x2e   :  { %p456_p9 = pnand %p455_p8, %p449_p5 }
  0x30   :  { %459 = shalt.err (!%p456_p9)
}
  0x31   :  { %43 = dma.hbm_to_vmem [thread:$0]  %s555_s2, 2048, %s38_s29, [#allocation5], %s465_s22, %s465_s22, %s466_s23  }
  0x32   :  { %460 = dma.done.wait [#allocation3], 128  }
  0x33   :  { %461 = vsyncadd [#allocation3], 4294967168 }
  0x34   :  { %462 = dma.done.wait [#allocation5], 4096  }
  0x35   :  { %463 = vsyncadd [#allocation5], 4294963200  ;;  %v469_v0 = vmov 0.0|0.0   ;;  %vm470_vm0 = vmmov 0   ;;  %v471_v1 = vmov 0.0   ;;  %v54_v2 = vld [vmem:[#allocation4] sm:$0xff] }
  0x36   :  { %338 = vmatprep.subr.bf16.mxu0 %v469_v0  ;;  %300 = vmatprep.mubr.msk.f32.mxu0 %vm470_vm0, %v471_v1  ;;  %v55_v3 = vld [vmem:[#allocation4 + $0x8] sm:$0xff]  ;;  %v56_v4 = vld [vmem:[#allocation4 + $0x10] sm:$0xff]  ;;  %v57_v6 = vld [vmem:[#allocation4 + $0x18] sm:$0xff] }
  0x37   :  { %362 = vmatprep.subr.bf16.mxu1 %v469_v0  ;;  %335 = vmatprep.mubr.msk.f32.mxu1 %vm470_vm0, %v471_v1  ;;  %v339_v5 = vpack.c.bf16 %v55_v3, %v54_v2  ;;  %v342_v7 = vpack.c.bf16 %v57_v6, %v56_v4  ;;  %v58_v8 = vld [vmem:[#allocation4 + $0x20] sm:$0xff]  ;;  %v59_v9 = vld [vmem:[#allocation4 + $0x28] sm:$0xff]  ;;  %v143_v12 = vld [vmem:[#allocation6 + $0x10] sm:$0xff] }
  0x38   :  { %v141_v10 = vld [vmem:[#allocation6] sm:$0xff]  ;;  %v142_v11 = vld [vmem:[#allocation6 + $0x8] sm:$0xff]  ;;  %v144_v13 = vld [vmem:[#allocation6 + $0x18] sm:$0xff]  ;;  %v345_v14 = vpack.c.bf16 %v59_v9, %v58_v8 }
  0x39   :  { %340 = vmatpush3.bf16.msra.mxu0 %v339_v5  ;;  %v363_v15 = vpack.c.bf16 %v142_v11, %v141_v10  ;;  %v60_v16 = vld [vmem:[#allocation4 + $0x30] sm:$0xff]  ;;  %v61_v17 = vld [vmem:[#allocation4 + $0x38] sm:$0xff]  ;;  %v366_v18 = vpack.c.bf16 %v144_v13, %v143_v12  ;;  %v145_v19 = vld [vmem:[#allocation6 + $0x20] sm:$0xff] }
  0x3a   :  { %341 = vmatprep.subr.bf16.mxu0 %v469_v0  ;;  %v146_v20 = vld [vmem:[#allocation6 + $0x28] sm:$0xff]  ;;  %v348_v21 = vpack.c.bf16 %v61_v17, %v60_v16  ;;  %v62_v22 = vld [vmem:[#allocation4 + $0x40] sm:$0xff]  ;;  %v147_v25 = vld [vmem:[#allocation6 + $0x30] sm:$0xff] }
  0x3b   :  { %364 = vmatpush3.bf16.msra.mxu1 %v363_v15  ;;  %v63_v23 = vld [vmem:[#allocation4 + $0x48] sm:$0xff]  ;;  %v369_v24 = vpack.c.bf16 %v146_v20, %v145_v19  ;;  %v148_v26 = vld [vmem:[#allocation6 + $0x38] sm:$0xff]  ;;  %v64_v28 = vld [vmem:[#allocation4 + $0x50] sm:$0xff] }
  0x3c   :  { %365 = vmatprep.subr.bf16.mxu1 %v469_v0  ;;  %v351_v27 = vpack.c.bf16 %v63_v23, %v62_v22  ;;  %v65_v29 = vld [vmem:[#allocation4 + $0x58] sm:$0xff]  ;;  %v372_v30 = vpack.c.bf16 %v148_v26, %v147_v25  ;;  %v149_v31 = vld [vmem:[#allocation6 + $0x40] sm:$0xff]  ;;  %v150_v32 = vld [vmem:[#allocation6 + $0x48] sm:$0xff] }
  0x3d   :  { %343 = vmatpush3.bf16.msra.mxu0 %v342_v7  ;;  %v354_v33 = vpack.c.bf16 %v65_v29, %v64_v28  ;;  %v66_v34 = vld [vmem:[#allocation4 + $0x60] sm:$0xff]  ;;  %v67_v35 = vld [vmem:[#allocation4 + $0x68] sm:$0xff]  ;;  %v375_v36 = vpack.c.bf16 %v150_v32, %v149_v31  ;;  %v151_v37 = vld [vmem:[#allocation6 + $0x50] sm:$0xff] }
  0x3e   :  { %344 = vmatprep.subr.bf16.mxu0 %v469_v0  ;;  %v152_v38 = vld [vmem:[#allocation6 + $0x58] sm:$0xff]  ;;  %v357_v39 = vpack.c.bf16 %v67_v35, %v66_v34  ;;  %v68_v40 = vld [vmem:[#allocation4 + $0x70] sm:$0xff]  ;;  %v153_v43 = vld [vmem:[#allocation6 + $0x60] sm:$0xff] }
  0x3f   :  { %367 = vmatpush3.bf16.msra.mxu1 %v366_v18  ;;  %v69_v41 = vld [vmem:[#allocation4 + $0x78] sm:$0xff]  ;;  %v378_v42 = vpack.c.bf16 %v152_v38, %v151_v37  ;;  %v154_v44 = vld [vmem:[#allocation6 + $0x68] sm:$0xff]  ;;  %v155_v48 = vld [vmem:[#allocation6 + $0x70] sm:$0xff] }
  0x40   :  { %368 = vmatprep.subr.bf16.mxu1 %v469_v0  ;;  %v360_v45 = vpack.c.bf16 %v69_v41, %v68_v40  ;;  %v381_v46 = vpack.c.bf16 %v154_v44, %v153_v43  ;;  %v53_v47 = vld [vmem:[#allocation2] sm:$0xff] }
  0x41   :  { %346 = vmatpush3.bf16.msra.mxu0 %v345_v14  ;;  %v156_v49 = vld [vmem:[#allocation6 + $0x78] sm:$0xff] }
  0x42   :  { %347 = vmatprep.subr.bf16.mxu0 %v469_v0  ;;  %v384_v50 = vpack.c.bf16 %v156_v49, %v155_v48 }
  0x43   :  { %370 = vmatpush3.bf16.msra.mxu1 %v369_v24 }
  0x44   :  { %371 = vmatprep.subr.bf16.mxu1 %v469_v0 }
  0x45   :  { %349 = vmatpush3.bf16.msra.mxu0 %v348_v21 }
  0x46   :  { %350 = vmatprep.subr.bf16.mxu0 %v469_v0 }
  0x47   :  { %373 = vmatpush3.bf16.msra.mxu1 %v372_v30 }
  0x48   :  { %374 = vmatprep.subr.bf16.mxu1 %v469_v0 }
  0x49   :  { %352 = vmatpush3.bf16.msra.mxu0 %v351_v27 }
  0x4a   :  { %353 = vmatprep.subr.bf16.mxu0 %v469_v0 }
  0x4b   :  { %376 = vmatpush3.bf16.msra.mxu1 %v375_v36 }
  0x4c   :  { %377 = vmatprep.subr.bf16.mxu1 %v469_v0 }
  0x4d   :  { %355 = vmatpush3.bf16.msra.mxu0 %v354_v33 }
  0x4e   :  { %356 = vmatprep.subr.bf16.mxu0 %v469_v0 }
  0x4f   :  { %379 = vmatpush3.bf16.msra.mxu1 %v378_v42 }
  0x50   :  { %380 = vmatprep.subr.bf16.mxu1 %v469_v0 }
  0x51   :  { %358 = vmatpush3.bf16.msra.mxu0 %v357_v39 }
  0x52   :  { %359 = vmatprep.subr.bf16.mxu0 %v469_v0 }
  0x53   :  { %382 = vmatpush3.bf16.msra.mxu1 %v381_v46 }
  0x54   :  { %383 = vmatprep.subr.bf16.mxu1 %v469_v0 }
  0x55   :  { %361 = vmatpush3.bf16.msra.mxu0 %v360_v45 }
  0x57   :  { %385 = vmatpush3.bf16.msra.mxu1 %v384_v50 }
  0x58   :  { %301 = vmatmul.mubr.f32.vlgmr.msra.gmra.mrb[0].mxu0 %v53_v47 }
 0x12b   :  { %v136_v51 = vpop.f32.mrb[0].mxu0 }
 0x12c   :  { %v140_v52 = vmul.f32 %v136_v51, %v136_v51  ;;  %v302_v53 = vpop.f32.mrb[1].mxu0 }
 0x12e   :  { %336 = vmatmul.mubr.f32.vlgmr.msra.gmra.mrb[0].mxu1 %v140_v52 }
 0x201   :  { %v223_v54 = vpop.f32.mrb[0].mxu1 }
 0x202   :  { %227 = vst [vmem:[%s556_s3] sm:$0xff] %v223_v54  ;;  %v337_v55 = vpop.f32.mrb[1].mxu1 }
 0x203   :  { %232 = vsyncpa [#allocation3], 1 }
 0x204   :  { %233 = vsyncpa [#allocation5], 1 }

</bundles_post_ra>
